<compile_context>
chip_gen: v7x
topology: tpu7x:2x2x1
jax: 0.10.0
libtpu: 0.0.40
codegen_flags: <defaults>
</compile_context>

<pallas_src>
import jax
import jax.numpy as jnp
from jax.experimental import pallas as pl
from jax.experimental.pallas import tpu as pltpu

KH = KW = 5
CIN = 3
COUT = 10


def _fused_kernel(patch_ref, w_ref, y_ref, o_ref):
    # patch_ref: (PROWS_PAD, B_TILE*S_PAD)  im2col patches, lane-dense cols
    # w_ref:     (COUT, PROWS_PAD)          conv weight (padded cols are zero)
    # y_ref:     (K, COUT, B_TILE*S_PAD)    y slab, long axis lane-dense
    # o_ref:     (K, 1)                     VMEM-resident accumulator across grid
    @pl.when(pl.program_id(0) == 0)
    def _init():
        o_ref[...] = jnp.zeros_like(o_ref)

    # Conv for all B_TILE batch elements in ONE lane-dense MXU matmul
    # (default precision -> single MXU pass).
    conv = jnp.dot(w_ref[...], patch_ref[...],
                   preferred_element_type=jnp.float32)        # (COUT, B*S_PAD)

    # Final contraction against y: f32 VPU multiply + XLU lane reductions.
    # (No narrow (1, chw) @ (chw, K) MXU matmul; padded lanes multiply zeros.)
    prod = conv[None, :, :] * y_ref[...]                      # (K, COUT, B*S_PAD)
    red = jnp.sum(prod, axis=-1)                              # (K, COUT)
    o_ref[...] += jnp.sum(red, axis=-1, keepdims=True)        # (K, 1)


@jax.jit
def cpp_toy_net_forward(x, y, conv_w, conv_b):
    """Fused CppToyNet.forward (eval mode): Conv2d(3,10,5) then reshape(1,-1) @ y."""
    n, cin, h, w = x.shape
    assert cin == CIN
    oh, ow = h - KH + 1, w - KW + 1
    s = oh * ow
    chw = COUT * s
    f, k = y.shape
    assert f == n * chw, "y rows must match flattened conv output"

    s_pad = ((s + 127) // 128) * 128        # 144 -> 256, lane-dense/unmasked
    prows = CIN * KH * KW                   # 75
    prows_pad = ((prows + 7) // 8) * 8      # 80, sublane aligned

    # B_TILE batch elements per grid step (N=2 demo -> one grid step).
    b_tile = 1
    for cand in (8, 4, 2):
        if n % cand == 0:
            b_tile = cand
            break
    # TODO(synk): on v7x (2 TCs) a multi-step grid could be split across cores
    # via per-core partial accumulators; with a single grid step it is moot.

    x = x.astype(jnp.float32)
    y = y.astype(jnp.float32)
    conv_w = conv_w.astype(jnp.float32)
    conv_b = conv_b.astype(jnp.float32)

    # ---- wrapper-side layout plumbing (tiny one-time XLA ops) ----
    # im2col patches, row order (ci, kh, kw) to match conv_w.reshape(COUT, -1).
    patch = jnp.stack(
        [x[:, :, kh:kh + oh, kw:kw + ow] for kh in range(KH) for kw in range(KW)],
        axis=2)                                         # (N, CIN, KH*KW, OH, OW)
    patch = patch.reshape(n, prows, s)                  # (N, 75, S)
    patch = jnp.pad(patch, ((0, 0), (0, prows_pad - prows), (0, s_pad - s)))
    # Fold batch into the lane axis: (PROWS_PAD, N*S_PAD), lane-dense.
    patch = patch.transpose(1, 0, 2).reshape(prows_pad, n * s_pad)

    w2 = conv_w.reshape(COUT, prows)
    w2 = jnp.pad(w2, ((0, 0), (0, prows_pad - prows)))  # (COUT, PROWS_PAD)

    # y (NCHW flatten order) -> (K, COUT, N*S_PAD) with the long axis lane-dense;
    # padded spatial columns are zero so they contribute nothing.
    y4 = y.reshape(n, COUT, s, k)
    y4 = jnp.pad(y4, ((0, 0), (0, 0), (0, s_pad - s), (0, 0)))  # (N, COUT, S_PAD, K)
    y3 = y4.transpose(3, 1, 0, 2).reshape(k, COUT, n * s_pad)

    # Bias folded out of the kernel: contribution = sum_c b[c] * sum_{n,s} y.
    y_cs = y.reshape(n, COUT, s, k).sum(axis=(0, 2))             # (COUT, K)
    bias_contrib = jnp.sum(conv_b[:, None] * y_cs, axis=0)[None, :]   # (1, K)

    flops = n * (2 * COUT * CIN * KH * KW * s + 2 * k * chw)
    bytes_accessed = 4 * (patch.size + w2.size + y3.size + k)

    out = pl.pallas_call(
        _fused_kernel,
        out_shape=jax.ShapeDtypeStruct((k, 1), jnp.float32),
        grid=(n // b_tile,),
        in_specs=[
            pl.BlockSpec((prows_pad, b_tile * s_pad), lambda i: (0, i)),
            pl.BlockSpec((COUT, prows_pad), lambda i: (0, 0)),
            pl.BlockSpec((k, COUT, b_tile * s_pad), lambda i: (0, 0, i)),
        ],
        # Same output block every step -> VMEM-resident accumulator.
        out_specs=pl.BlockSpec((k, 1), lambda i: (0, 0)),
        compiler_params=pltpu.CompilerParams(
            # The batch axis carries the accumulator -> must be "arbitrary".
            dimension_semantics=("arbitrary",)),
        cost_estimate=pl.CostEstimate(
            flops=flops, transcendentals=0, bytes_accessed=bytes_accessed),
    )(patch, w2, y3)

    return out.reshape(1, k) + bias_contrib


if __name__ == "__main__":
    key = jax.random.PRNGKey(0)
    k_x, k_y, k_w, k_b = jax.random.split(key, 4)

    N, H, W = 2, 16, 16
    OH, OW = H - KH + 1, W - KW + 1
    F = N * COUT * OH * OW        # 2880
    K = 8

    x = jax.random.normal(k_x, (N, CIN, H, W), jnp.float32)
    y = jax.random.normal(k_y, (F, K), jnp.float32)
    conv_w = jax.random.normal(k_w, (COUT, CIN, KH, KW), jnp.float32) * 0.1
    conv_b = jax.random.normal(k_b, (COUT,), jnp.float32) * 0.1

    out = jax.block_until_ready(cpp_toy_net_forward(x, y, conv_w, conv_b))
    assert out.shape == (1, K)

    # Reference with plain XLA ops.  The conv uses DEFAULT precision (the same
    # single-pass-bf16 MXU rounding the kernel now uses); the final matmul uses
    # HIGHEST to match the kernel's f32 VPU contraction.  Tolerance leaves
    # headroom for single-pass bf16 MXU numerics.
    ref_conv = jax.lax.conv_general_dilated(
        x, conv_w, window_strides=(1, 1), padding="VALID",
        dimension_numbers=("NCHW", "OIHW", "NCHW"),
    ) + conv_b.reshape(1, COUT, 1, 1)
    ref = jnp.dot(ref_conv.reshape(1, -1), y,
                  precision=jax.lax.Precision.HIGHEST)
    if not jnp.allclose(out, ref, atol=5e-2, rtol=2e-2):
        max_err = jnp.max(jnp.abs(out - ref))
        raise AssertionError(f"Pallas result mismatch vs reference, max err={max_err}")

    print("KERNEL_OK")
</pallas_src>

<mosaic_0001>
module attributes {stable_mosaic.version = 11 : i64} {
  func.func @_fused_kernel(%arg0: i32, %arg1: memref<80x512xf32, #tpu.memory_space<vmem>>, %arg2: memref<10x80xf32, #tpu.memory_space<vmem>>, %arg3: memref<8x10x512xf32, #tpu.memory_space<vmem>>, %arg4: memref<8x1xf32, #tpu.memory_space<vmem>>) attributes {dimension_semantics = [#tpu.dimension_semantics<arbitrary>], iteration_bounds = array<i64: 1>, scalar_prefetch = 0 : i64, scratch_operands = 0 : i64, tpu.core_type = #tpu.core_type<tc>, window_params = [{transform_indices = @transform_0, window_bounds = array<i64: 80, 512>}, {pipeline_mode = #tpu.pipeline_mode<synchronous>, transform_indices = @transform_1, window_bounds = array<i64: 10, 80>}, {transform_indices = @transform_2, window_bounds = array<i64: 8, 10, 512>}, {pipeline_mode = #tpu.pipeline_mode<synchronous>, transform_indices = @transform_3, window_bounds = array<i64: 8, 1>}]} {
    %c0_i32 = arith.constant 0 : i32
    %0 = arith.cmpi eq, %arg0, %c0_i32 : i32
    %1 = arith.extui %0 : i1 to i32
    %c0_i32_0 = arith.constant 0 : i32
    %2 = arith.cmpi ne, %1, %c0_i32_0 : i32
    scf.if %2 {
      %cst_13 = arith.constant 0.000000e+00 : f32
      %16 = vector.broadcast %cst_13 : f32 to vector<8x1xf32>
      %c0_14 = arith.constant 0 : index
      %c0_15 = arith.constant 0 : index
      %17 = vector.load %arg4[%c0_14, %c0_15] : memref<8x1xf32, #tpu.memory_space<vmem>>, vector<8x1xf32>
      tpu.vector_store %arg4[%c0_14, %c0_15], %16 {strides = array<i32>} : memref<8x1xf32, #tpu.memory_space<vmem>>, vector<8x1xf32>,
    } else {
    }
    %c0 = arith.constant 0 : index
    %c0_1 = arith.constant 0 : index
    %3 = vector.load %arg2[%c0, %c0_1] : memref<10x80xf32, #tpu.memory_space<vmem>>, vector<10x80xf32>
    %c0_2 = arith.constant 0 : index
    %c0_3 = arith.constant 0 : index
    %4 = vector.load %arg1[%c0_2, %c0_3] : memref<80x512xf32, #tpu.memory_space<vmem>>, vector<80x512xf32>
    %cst = arith.constant dense<0.000000e+00> : vector<10x512xf32>
    %5 = tpu.matmul %3, %4, %cst {dimension_numbers = #tpu.dot_dimension_numbers<[1], [0], [0], [1], [0, 0, 1, 1], [], []>} : vector<10x80xf32>, vector<80x512xf32>, vector<10x512xf32> -> vector<10x512xf32>
    %6 = vector.shape_cast %5 : vector<10x512xf32> to vector<1x10x512xf32>
    %c0_4 = arith.constant 0 : index
    %c0_5 = arith.constant 0 : index
    %c0_6 = arith.constant 0 : index
    %7 = vector.load %arg3[%c0_4, %c0_5, %c0_6] : memref<8x10x512xf32, #tpu.memory_space<vmem>>, vector<8x10x512xf32>
    %8 = vector.broadcast %6 : vector<1x10x512xf32> to vector<8x10x512xf32>
    %9 = arith.mulf %8, %7 : vector<8x10x512xf32>
    %cst_7 = arith.constant dense<0.000000e+00> : vector<8x10xf32>
    %10 = vector.multi_reduction <add>, %9, %cst_7 [2] : vector<8x10x512xf32> to vector<8x10xf32>
    %c0_8 = arith.constant 0 : index
    %c0_9 = arith.constant 0 : index
    %11 = vector.load %arg4[%c0_8, %c0_9] : memref<8x1xf32, #tpu.memory_space<vmem>>, vector<8x1xf32>
    %cst_10 = arith.constant dense<0.000000e+00> : vector<8xf32>
    %12 = vector.multi_reduction <add>, %10, %cst_10 [1] : vector<8x10xf32> to vector<8xf32>
    %13 = vector.shape_cast %12 : vector<8xf32> to vector<8x1xf32>
    %14 = arith.addf %11, %13 : vector<8x1xf32>
    %c0_11 = arith.constant 0 : index
    %c0_12 = arith.constant 0 : index
    %15 = vector.load %arg4[%c0_11, %c0_12] : memref<8x1xf32, #tpu.memory_space<vmem>>, vector<8x1xf32>
    tpu.vector_store %arg4[%c0_11, %c0_12], %14 {strides = array<i32>} : memref<8x1xf32, #tpu.memory_space<vmem>>, vector<8x1xf32>,
    return
  }
  func.func @transform_0(%arg0: i32) -> (i32, i32) {
    %c0_i32 = arith.constant 0 : i32
    %c0_i32_0 = arith.constant 0 : i32
    return %c0_i32, %arg0 : i32, i32
  }
  func.func @transform_1(%arg0: i32) -> (i32, i32) {
    %c0_i32 = arith.constant 0 : i32
    %c0_i32_0 = arith.constant 0 : i32
    %c0_i32_1 = arith.constant 0 : i32
    return %c0_i32, %c0_i32_0 : i32, i32
  }
  func.func @transform_2(%arg0: i32) -> (i32, i32, i32) {
    %c0_i32 = arith.constant 0 : i32
    %c0_i32_0 = arith.constant 0 : i32
    %c0_i32_1 = arith.constant 0 : i32
    return %c0_i32, %c0_i32_0, %arg0 : i32, i32, i32
  }
  func.func @transform_3(%arg0: i32) -> (i32, i32) {
    %c0_i32 = arith.constant 0 : i32
    %c0_i32_0 = arith.constant 0 : i32
    %c0_i32_1 = arith.constant 0 : i32
    return %c0_i32, %c0_i32_0 : i32, i32
  }
}

</mosaic_0001>

<bundles_post_ra>
// kernel: cpp_toy_net_forward.1
= control target key start
LH: loop header
LB: loop body
LE: loop exit
PB: predicated region body
PF: predicated region fallthrough
CT: control target
= control target key end

     0   :  { %v628_v3 = vmov 0.0   ;;  %vm62_vm0 = vcmask 654336   ;;  %vm356_vm1 = vcmask 1041408   ;;  %vm18_vm2 = vcmask 7168   ;;  %s1103_s0 = inlined_call_operand.vmem [shape: f32[80,512], index: 0, kind: input, shape index: {}]   ;;  %s1104_s1 = inlined_call_operand.vmem [shape: f32[10,80], index: 1, kind: input, shape index: {}]   ;;  %s1105_s2 = inlined_call_operand.vmem [shape: f32[8,10,512], index: 2, kind: input, shape index: {}]   ;;  %s1106_s3 = inlined_call_operand.vmem [shape: f32[8,1], index: 3, kind: output, shape index: {}]  }
   0x1   :  { %v23_v0 = vld [vmem:[%s1103_s0 + $0x8] sm:$0xff]  ;;  %v22_v2 = vld [vmem:[%s1103_s0] sm:$0xff]  ;;  %133 = vmatprep.mubr.f32.mxu0 %v628_v3  ;;  %210 = vmatprep.mubr.f32.mxu1 %v628_v3  ;;  %v25_v6 = vld [vmem:[%s1103_s0 + $0x18] sm:$0xff]  ;;  %19 = vst.msk [vmem:[%s1106_s3] sm:$0xff] %vm18_vm2, %v628_v3  ;;  %vm492_vm3 = vcmask 130112   ;;  %vm557_vm4 = vcmask 1041409  }
   0x2   :  { %v27_v1 = vld [vmem:[%s1103_s0 + $0x28] sm:$0xff]  ;;  %v26_v5 = vld [vmem:[%s1103_s0 + $0x20] sm:$0xff]  ;;  %v29_v7 = vld [vmem:[%s1103_s0 + $0x38] sm:$0xff]  ;;  %vm559_vm5 = vcmask 1042434   ;;  %vm561_vm6 = vcmask 1043459   ;;  %vm563_vm7 = vcmask 1044484  }
   0x3   :  { %v587_v4 = vpack.c.bf16 %v27_v1, %v23_v0  ;;  %v589_v8 = vpack.c.bf16 %v26_v5, %v22_v2  ;;  %v607_v9 = vpack.c.bf16 %v29_v7, %v25_v6  ;;  %v24_v10 = vld [vmem:[%s1103_s0 + $0x10] sm:$0xff]  ;;  %v31_v12 = vld [vmem:[%s1103_s0 + $0x48] sm:$0xff]  ;;  %v30_v15 = vld [vmem:[%s1103_s0 + $0x40] sm:$0xff]  ;;  %vm565_vm8 = vcmask 1045509  }
   0x4   :  { %v28_v11 = vld [vmem:[%s1103_s0 + $0x30] sm:$0xff]  ;;  %v35_v14 = vld [vmem:[%s1103_s0 + $0x68] sm:$0xff]  ;;  %v34_v16 = vld [vmem:[%s1103_s0 + $0x60] sm:$0xff]  ;;  %vm567_vm9 = vcmask 1046534   ;;  %vm569_vm10 = vcmask 1047559   ;;  %vm572_vm11 = vcmask 80896  }
   0x5   :  { %588 = vmatprep.subr.bf16.mxu0 %v587_v4  ;;  %v609_v13 = vpack.c.bf16 %v28_v11, %v24_v10  ;;  %608 = vmatprep.subr.bf16.mxu1 %v607_v9  ;;  %v591_v17 = vpack.c.bf16 %v35_v14, %v31_v12  ;;  %v593_v18 = vpack.c.bf16 %v34_v16, %v30_v15  ;;  %v33_v19 = vld [vmem:[%s1103_s0 + $0x58] sm:$0xff]  ;;  %v32_v21 = vld [vmem:[%s1103_s0 + $0x50] sm:$0xff]  ;;  %v39_v24 = vld [vmem:[%s1103_s0 + $0x88] sm:$0xff] }
   0x6   :  { %590 = vmatpush1.bf16.msra.mxu0 %v589_v8  ;;  %v37_v20 = vld [vmem:[%s1103_s0 + $0x78] sm:$0xff]  ;;  %v36_v23 = vld [vmem:[%s1103_s0 + $0x70] sm:$0xff]  ;;  %v43_v25 = vld [vmem:[%s1103_s0 + $0xa8] sm:$0xff] }
   0x7   :  { %610 = vmatpush1.bf16.msra.mxu1 %v609_v13  ;;  %v611_v22 = vpack.c.bf16 %v37_v20, %v33_v19  ;;  %592 = vmatprep.subr.bf16.mxu0 %v591_v17  ;;  %v613_v26 = vpack.c.bf16 %v36_v23, %v32_v21  ;;  %v595_v27 = vpack.c.bf16 %v43_v25, %v39_v24  ;;  %v38_v28 = vld [vmem:[%s1103_s0 + $0x80] sm:$0xff]  ;;  %v41_v30 = vld [vmem:[%s1103_s0 + $0x98] sm:$0xff]  ;;  %v40_v32 = vld [vmem:[%s1103_s0 + $0x90] sm:$0xff] }
   0x8   :  { %v42_v29 = vld [vmem:[%s1103_s0 + $0xa0] sm:$0xff]  ;;  %v45_v31 = vld [vmem:[%s1103_s0 + $0xb8] sm:$0xff]  ;;  %v44_v33 = vld [vmem:[%s1103_s0 + $0xb0] sm:$0xff] }
   0x9   :  { %612 = vmatprep.subr.bf16.mxu1 %v611_v22  ;;  %v597_v34 = vpack.c.bf16 %v42_v29, %v38_v28  ;;  %v615_v35 = vpack.c.bf16 %v45_v31, %v41_v30  ;;  %v47_v36 = vld [vmem:[%s1103_s0 + $0xc8] sm:$0xff]  ;;  %v46_v38 = vld [vmem:[%s1103_s0 + $0xc0] sm:$0xff]  ;;  %v617_v39 = vpack.c.bf16 %v44_v33, %v40_v32  ;;  %v49_v42 = vld [vmem:[%s1103_s0 + $0xd8] sm:$0xff] }
   0xa   :  { %594 = vmatpush1.bf16.msra.mxu0 %v593_v18  ;;  %v51_v37 = vld [vmem:[%s1103_s0 + $0xe8] sm:$0xff]  ;;  %v50_v41 = vld [vmem:[%s1103_s0 + $0xe0] sm:$0xff]  ;;  %v53_v43 = vld [vmem:[%s1103_s0 + $0xf8] sm:$0xff] }
   0xb   :  { %614 = vmatpush1.bf16.msra.mxu1 %v613_v26  ;;  %596 = vmatprep.subr.bf16.mxu0 %v595_v27  ;;  %v599_v40 = vpack.c.bf16 %v51_v37, %v47_v36  ;;  %v619_v44 = vpack.c.bf16 %v53_v43, %v49_v42  ;;  %v48_v45 = vld [vmem:[%s1103_s0 + $0xd0] sm:$0xff]  ;;  %v55_v47 = vld [vmem:[%s1103_s0 + $0x108] sm:$0xff]  ;;  %v601_v49 = vpack.c.bf16 %v50_v41, %v46_v38  ;;  %v57_v50 = vld [vmem:[%s1103_s0 + $0x118] sm:$0xff] }
   0xc   :  { %616 = vmatprep.subr.bf16.mxu1 %v615_v35  ;;  %v52_v46 = vld [vmem:[%s1103_s0 + $0xf0] sm:$0xff]  ;;  %v59_v48 = vld [vmem:[%s1103_s0 + $0x128] sm:$0xff]  ;;  %v61_v51 = vld [vmem:[%s1103_s0 + $0x138] sm:$0xff] }
   0xd   :  { %v621_v52 = vpack.c.bf16 %v52_v46, %v48_v45  ;;  %v603_v53 = vpack.c.bf16 %v59_v48, %v55_v47  ;;  %v54_v54 = vld [vmem:[%s1103_s0 + $0x100] sm:$0xff]  ;;  %v623_v56 = vpack.c.bf16 %v61_v51, %v57_v50  ;;  %v56_v57 = vld [vmem:[%s1103_s0 + $0x110] sm:$0xff]  ;;  %v21_v62 = vld [vmem:[%s1104_s1 + $0x8] sm:$0x3] }
   0xe   :  { %598 = vmatpush1.bf16.msra.mxu0 %v597_v34  ;;  %v58_v55 = vld [vmem:[%s1103_s0 + $0x120] sm:$0xff]  ;;  %v60_v58 = vld [vmem:[%s1103_s0 + $0x130] sm:$0xff]  ;;  %v232_v1 = vld [vmem:[%s1105_s2 + $0x48] sm:$0xff] }
   0xf   :  { %618 = vmatpush1.bf16.msra.mxu1 %v617_v39  ;;  %600 = vmatprep.subr.bf16.mxu0 %v599_v40  ;;  %v605_v59 = vpack.c.bf16 %v58_v55, %v54_v54  ;;  %v625_v60 = vpack.c.bf16 %v60_v58, %v56_v57  ;;  %v20_v61 = vld [vmem:[%s1104_s1] sm:$0xff]  ;;  %v224_v2 = vld [vmem:[%s1105_s2 + $0x8] sm:$0xff]  ;;  %v233_v5 = vld [vmem:[%s1105_s2 + $0x50] sm:$0xff] }
  0x10   :  { %620 = vmatprep.subr.bf16.mxu1 %v619_v44  ;;  %v231_v63 = vld [vmem:[%s1105_s2 + $0x40] sm:$0xff]  ;;  %v225_v6 = vld [vmem:[%s1105_s2 + $0x10] sm:$0xff]  ;;  %v240_v7 = vld [vmem:[%s1105_s2 + $0x88] sm:$0xff] }
  0x11   :  { %v223_v0 = vld [vmem:[%s1105_s2] sm:$0xff]  ;;  %v234_v9 = vld [vmem:[%s1105_s2 + $0x58] sm:$0xff]  ;;  %v241_v10 = vld [vmem:[%s1105_s2 + $0x90] sm:$0xff] }
  0x12   :  { %602 = vmatpush1.bf16.msra.mxu0 %v601_v49  ;;  %v239_v4 = vld [vmem:[%s1105_s2 + $0x80] sm:$0xff]  ;;  %v226_v15 = vld [vmem:[%s1105_s2 + $0x18] sm:$0xff]  ;;  %v248_v18 = vld [vmem:[%s1105_s2 + $0xc8] sm:$0xff] }
  0x13   :  { %622 = vmatpush1.bf16.msra.mxu1 %v621_v52  ;;  %604 = vmatprep.subr.bf16.mxu0 %v603_v53  ;;  %v247_v11 = vld [vmem:[%s1105_s2 + $0xc0] sm:$0xff]  ;;  %v242_v24 = vld [vmem:[%s1105_s2 + $0x98] sm:$0xff]  ;;  %v249_v26 = vld [vmem:[%s1105_s2 + $0xd0] sm:$0xff] }
  0x14   :  { %624 = vmatprep.subr.bf16.mxu1 %v623_v56  ;;  %v235_v25 = vld [vmem:[%s1105_s2 + $0x60] sm:$0x3]  ;;  %v236_v30 = vld [vmem:[%s1105_s2 + $0x68] sm:$0x3]  ;;  %v237_v31 = vld [vmem:[%s1105_s2 + $0x70] sm:$0x3] }
  0x15   :  { %v238_v37 = vld [vmem:[%s1105_s2 + $0x78] sm:$0x3]  ;;  %v243_v51 = vld [vmem:[%s1105_s2 + $0xa0] sm:$0x3]  ;;  %v244_v56 = vld [vmem:[%s1105_s2 + $0xa8] sm:$0x3] }
  0x16   :  { %606 = vmatpush1.bf16.msra.mxu0 %v605_v59  ;;  %v250_v50 = vld [vmem:[%s1105_s2 + $0xd8] sm:$0xff]  ;;  %v245_v57 = vld [vmem:[%s1105_s2 + $0xb0] sm:$0x3] }
  0x17   :  { %626 = vmatpush1.bf16.msra.mxu1 %v625_v60 }
  0x19   :  { %583 = vmatmul.mubr.msk.f32.vlgmr.msra.gmra.mrb[0].mxu0 %vm62_vm0, %v20_v61 }
  0x1a   :  { %585 = vmatmul.mubr.msk.f32.vlgmr.msra.gmra.mrb[0].mxu1 %vm62_vm0, %v20_v61  ;;  %139 = vmatprep.mubr.f32.mxu0 %v628_v3 }
  0x1b   :  { %216 = vmatprep.mubr.f32.mxu1 %v628_v3 }
  0x1d   :  { %584 = vmatmul.mubr.msk.f32.gmra.mrb[2].mxu0 %vm62_vm0, %v21_v62 }
  0x1e   :  { %586 = vmatmul.mubr.msk.f32.gmra.mrb[2].mxu1 %vm62_vm0, %v21_v62  ;;  %v246_v62 = vld [vmem:[%s1105_s2 + $0xb8] sm:$0x3] }
  0xec   :  { %v803_v8 = vpop.f32.mrb[0].mxu0 }
  0xed   :  { %v814_v12 = vpop.f32.mrb[1].mxu0  ;;  %v816_v13 = vpop.f32.mrb[0].mxu1  ;;  %v295_v14 = vmul.f32 %v231_v63, %v803_v8  ;;  %v287_v16 = vmul.f32 %v223_v0, %v803_v8  ;;  %v303_v17 = vmul.f32 %v239_v4, %v803_v8  ;;  %v311_v32 = vmul.f32 %v247_v11, %v803_v8  ;;  %v255_v63 = vld [vmem:[%s1105_s2 + $0x100] sm:$0xff]  ;;  %v257_v11 = vld [vmem:[%s1105_s2 + $0x110] sm:$0xff] }
  0xee   :  { %v827_v19 = vpop.f32.mrb[1].mxu1  ;;  %v296_v20 = vmul.f32 %v232_v1, %v814_v12  ;;  %v297_v21 = vmul.f32 %v233_v5, %v816_v13  ;;  %v288_v22 = vmul.f32 %v224_v2, %v814_v12  ;;  %v289_v23 = vmul.f32 %v225_v6, %v816_v13  ;;  %v256_v5 = vld [vmem:[%s1105_s2 + $0x108] sm:$0xff] }
  0xef   :  { %v298_v27 = vmul.f32 %v234_v9, %v827_v19  ;;  %v304_v28 = vmul.f32 %v240_v7, %v814_v12  ;;  %v305_v29 = vmul.f32 %v241_v10, %v816_v13  ;;  %v290_v35 = vmul.f32 %v226_v15, %v827_v19 }
  0xf0   :  { %v852_v33 = vpop.f32.mrb[2].mxu0  ;;  %v366_v34 = vadd.f32 %v296_v20, %v295_v14  ;;  %v351_v36 = vadd.f32 %v288_v22, %v287_v16  ;;  %v312_v38 = vmul.f32 %v248_v18, %v814_v12  ;;  %v306_v41 = vmul.f32 %v242_v24, %v827_v19  ;;  %v258_v14 = vld [vmem:[%s1105_s2 + $0x118] sm:$0xff]  ;;  %v251_v20 = vld [vmem:[%s1105_s2 + $0xe0] sm:$0x3]  ;;  %v253_v22 = vld [vmem:[%s1105_s2 + $0xf0] sm:$0x3] }
  0xf1   :  { %v859_v39 = vpop.f32.mrb[3].mxu0  ;;  %v861_v40 = vpop.f32.mrb[2].mxu1  ;;  %v380_v42 = vadd.f32 %v304_v28, %v303_v17  ;;  %v299_v43 = vmul.f32 %v235_v25, %v852_v33  ;;  %v313_v44 = vmul.f32 %v249_v26, %v816_v13  ;;  %v314_v2 = vmul.f32 %v250_v50, %v827_v19  ;;  %v263_v28 = vld [vmem:[%s1105_s2 + $0x140] sm:$0xff] }
  0xf2   :  { %v866_v45 = vpop.f32.mrb[3].mxu1  ;;  %v367_v46 = vadd.f32 %v366_v34, %v297_v21  ;;  %v352_v47 = vadd.f32 %v351_v36, %v289_v23  ;;  %v300_v48 = vmul.f32 %v236_v30, %v859_v39  ;;  %v301_v49 = vmul.f32 %v237_v31, %v861_v40  ;;  %v252_v21 = vld [vmem:[%s1105_s2 + $0xe8] sm:$0x3] }
  0xf3   :  { %v381_v52 = vadd.f32 %v380_v42, %v305_v29  ;;  %v302_v53 = vmul.f32 %v238_v37, %v866_v45  ;;  %v371_v54 = vsel %vm356_vm1, %v299_v43, 0.0  ;;  %v394_v55 = vadd.f32 %v312_v38, %v311_v32  ;;  %v264_v34 = vld [vmem:[%s1105_s2 + $0x148] sm:$0xff] }
  0xf4   :  { %v368_v58 = vadd.f32 %v367_v46, %v298_v27  ;;  %v353_v59 = vadd.f32 %v352_v47, %v290_v35  ;;  %v372_v60 = vsel %vm356_vm1, %v300_v48, 0.0  ;;  %v374_v61 = vsel %vm356_vm1, %v301_v49, 0.0  ;;  %v254_v27 = vld [vmem:[%s1105_s2 + $0xf8] sm:$0x3]  ;;  %v259_v48 = vld [vmem:[%s1105_s2 + $0x120] sm:$0x3] }
  0xf5   :  { %v382_v0 = vadd.f32 %v381_v52, %v306_v41  ;;  %v373_v1 = vadd.f32 %v372_v60, %v371_v54  ;;  %v395_v4 = vadd.f32 %v394_v55, %v313_v44  ;;  %v376_v6 = vsel %vm356_vm1, %v302_v53, 0.0  ;;  %v265_v41 = vld [vmem:[%s1105_s2 + $0x150] sm:$0xff]  ;;  %v266_v46 = vld [vmem:[%s1105_s2 + $0x158] sm:$0xff]  ;;  %v227_v49 = vld [vmem:[%s1105_s2 + $0x20] sm:$0x3] }
  0xf6   :  { %369 = vadd.xlane.f32.xlu1 %v368_v58  ;;  %354 = vadd.xlane.f32.xlu0 %v353_v59  ;;  %v307_v7 = vmul.f32 %v243_v51, %v852_v33  ;;  %v308_v9 = vmul.f32 %v244_v56, %v859_v39  ;;  %v309_v10 = vmul.f32 %v245_v57, %v861_v40  ;;  %v260_v54 = vld [vmem:[%s1105_s2 + $0x128] sm:$0x3]  ;;  %v261_v55 = vld [vmem:[%s1105_s2 + $0x130] sm:$0x3]  ;;  %v262_v60 = vld [vmem:[%s1105_s2 + $0x138] sm:$0x3] }
  0xf7   :  { %v375_v15 = vadd.f32 %v374_v61, %v373_v1  ;;  %v396_v16 = vadd.f32 %v395_v4, %v314_v2  ;;  %v310_v17 = vmul.f32 %v246_v62, %v866_v45  ;;  %v319_v18 = vmul.f32 %v255_v63, %v803_v8  ;;  %v228_v61 = vld [vmem:[%s1105_s2 + $0x28] sm:$0x3] }
  0xf8   :  { %v385_v23 = vsel %vm356_vm1, %v307_v7, 0.0  ;;  %v386_v24 = vsel %vm356_vm1, %v308_v9, 0.0  ;;  %v388_v25 = vsel %vm356_vm1, %v309_v10, 0.0  ;;  %v320_v26 = vmul.f32 %v256_v5, %v814_v12  ;;  %v229_v7 = vld [vmem:[%s1105_s2 + $0x30] sm:$0x3] }
  0xf9   :  { %v377_v29 = vadd.f32 %v376_v6, %v375_v15  ;;  %v387_v30 = vadd.f32 %v386_v24, %v385_v23  ;;  %v390_v31 = vsel %vm356_vm1, %v310_v17, 0.0  ;;  %v321_v32 = vmul.f32 %v257_v11, %v816_v13  ;;  %v230_v11 = vld [vmem:[%s1105_s2 + $0x38] sm:$0x3] }
  0xfa   :  { %383 = vadd.xlane.f32.xlu0 %v382_v0  ;;  %v322_v35 = vmul.f32 %v258_v14, %v827_v19  ;;  %v408_v36 = vadd.f32 %v320_v26, %v319_v18  ;;  %v315_v37 = vmul.f32 %v251_v20, %v852_v33  ;;  %v316_v38 = vmul.f32 %v252_v21, %v859_v39 }
  0xfb   :  { %378 = vadd.xlane.f32.xlu1 %v377_v29  ;;  %v389_v42 = vadd.f32 %v388_v25, %v387_v30  ;;  %v317_v43 = vmul.f32 %v253_v22, %v861_v40  ;;  %v318_v44 = vmul.f32 %v254_v27, %v866_v45  ;;  %v327_v47 = vmul.f32 %v263_v28, %v803_v8  ;;  %v268_v22 = vld [vmem:[%s1105_s2 + $0x168] sm:$0x3]  ;;  %v269_v27 = vld [vmem:[%s1105_s2 + $0x170] sm:$0x3]  ;;  %v270_v28 = vld [vmem:[%s1105_s2 + $0x178] sm:$0x3] }
  0xfc   :  { %v409_v50 = vadd.f32 %v408_v36, %v321_v32  ;;  %v399_v51 = vsel %vm356_vm1, %v315_v37, 0.0  ;;  %v400_v52 = vsel %vm356_vm1, %v316_v38, 0.0  ;;  %v328_v53 = vmul.f32 %v264_v34, %v814_v12  ;;  %v271_v34 = vld [vmem:[%s1105_s2 + $0x180] sm:$0xff] }
  0xfd   :  { %v391_v56 = vadd.f32 %v390_v31, %v389_v42  ;;  %v401_v57 = vadd.f32 %v400_v52, %v399_v51  ;;  %v402_v58 = vsel %vm356_vm1, %v317_v43, 0.0  ;;  %v404_v59 = vsel %vm356_vm1, %v318_v44, 0.0 }
  0xfe   :  { %397 = vadd.xlane.f32.xlu0 %v396_v16  ;;  %v410_v62 = vadd.f32 %v409_v50, %v322_v35  ;;  %v329_v63 = vmul.f32 %v265_v41, %v816_v13  ;;  %v330_v0 = vmul.f32 %v266_v46, %v827_v19  ;;  %v422_v1 = vadd.f32 %v328_v53, %v327_v47  ;;  %v267_v16 = vld [vmem:[%s1105_s2 + $0x160] sm:$0x3]  ;;  %v272_v41 = vld [vmem:[%s1105_s2 + $0x188] sm:$0xff]  ;;  %v273_v47 = vld [vmem:[%s1105_s2 + $0x190] sm:$0xff] }
  0xff   :  { %392 = vadd.xlane.f32.xlu1 %v391_v56  ;;  %v403_v2 = vadd.f32 %v402_v58, %v401_v57  ;;  %v323_v4 = vmul.f32 %v259_v48, %v852_v33  ;;  %v324_v5 = vmul.f32 %v260_v54, %v859_v39  ;;  %v325_v6 = vmul.f32 %v261_v55, %v861_v40  ;;  %v274_v48 = vld [vmem:[%s1105_s2 + $0x198] sm:$0xff]  ;;  %v276_v54 = vld [vmem:[%s1105_s2 + $0x1a8] sm:$0x3]  ;;  %v277_v55 = vld [vmem:[%s1105_s2 + $0x1b0] sm:$0x3] }
 0x100   :  { %v423_v9 = vadd.f32 %v422_v1, %v329_v63  ;;  %v326_v10 = vmul.f32 %v262_v60, %v866_v45  ;;  %v291_v14 = vmul.f32 %v227_v49, %v852_v33  ;;  %v292_v15 = vmul.f32 %v228_v61, %v859_v39  ;;  %v275_v49 = vld [vmem:[%s1105_s2 + $0x1a0] sm:$0x3]  ;;  %v278_v60 = vld [vmem:[%s1105_s2 + $0x1b8] sm:$0x3] }
 0x101   :  { %v405_v17 = vadd.f32 %v404_v59, %v403_v2  ;;  %v413_v18 = vsel %vm356_vm1, %v323_v4, 0.0  ;;  %v414_v20 = vsel %vm356_vm1, %v324_v5, 0.0  ;;  %v416_v21 = vsel %vm356_vm1, %v325_v6, 0.0  ;;  %v279_v61 = vld [vmem:[%s1105_s2 + $0x1c0] sm:$0xff] }
 0x102   :  { %411 = vadd.xlane.f32.xlu0 %v410_v62  ;;  %v424_v23 = vadd.f32 %v423_v9, %v330_v0  ;;  %v415_v24 = vadd.f32 %v414_v20, %v413_v18  ;;  %v418_v25 = vsel %vm356_vm1, %v326_v10, 0.0  ;;  %v293_v26 = vmul.f32 %v229_v7, %v861_v40  ;;  %v280_v62 = vld [vmem:[%s1105_s2 + $0x1c8] sm:$0xff]  ;;  %v281_v9 = vld [vmem:[%s1105_s2 + $0x1d0] sm:$0xff] }
 0x103   :  { %406 = vadd.xlane.f32.xlu1 %v405_v17  ;;  %v294_v29 = vmul.f32 %v230_v11, %v866_v45  ;;  %v357_v30 = vsel %vm356_vm1, %v291_v14, 0.0  ;;  %v358_v31 = vsel %vm356_vm1, %v292_v15, 0.0  ;;  %v331_v32 = vmul.f32 %v267_v16, %v852_v33  ;;  %v283_v16 = vld [vmem:[%s1105_s2 + $0x1e0] sm:$0x3]  ;;  %v284_v17 = vld [vmem:[%s1105_s2 + $0x1e8] sm:$0x3] }
 0x104   :  { %v417_v35 = vadd.f32 %v416_v21, %v415_v24  ;;  %v359_v36 = vadd.f32 %v358_v31, %v357_v30  ;;  %v360_v37 = vsel %vm356_vm1, %v293_v26, 0.0  ;;  %v332_v38 = vmul.f32 %v268_v22, %v859_v39 }
 0x105   :  { %v362_v42 = vsel %vm356_vm1, %v294_v29, 0.0  ;;  %v333_v43 = vmul.f32 %v269_v27, %v861_v40  ;;  %v334_v44 = vmul.f32 %v270_v28, %v866_v45  ;;  %v427_v46 = vsel %vm356_vm1, %v331_v32, 0.0 }
 0x106   :  { %425 = vadd.xlane.f32.xlu0 %v424_v23  ;;  %v419_v50 = vadd.f32 %v418_v25, %v417_v35  ;;  %v361_v51 = vadd.f32 %v360_v37, %v359_v36  ;;  %v428_v52 = vsel %vm356_vm1, %v332_v38, 0.0  ;;  %v335_v53 = vmul.f32 %v271_v34, %v803_v8  ;;  %v286_v25 = vld [vmem:[%s1105_s2 + $0x1f8] sm:$0x3] }
 0x107   :  { %v429_v56 = vadd.f32 %v428_v52, %v427_v46  ;;  %v430_v57 = vsel %vm356_vm1, %v333_v43, 0.0  ;;  %v432_v58 = vsel %vm356_vm1, %v334_v44, 0.0  ;;  %v336_v59 = vmul.f32 %v272_v41, %v814_v12 }
 0x108   :  { %420 = vadd.xlane.f32.xlu1 %v419_v50  ;;  %v363_v63 = vadd.f32 %v362_v42, %v361_v51  ;;  %v337_v0 = vmul.f32 %v273_v47, %v816_v13  ;;  %v338_v1 = vmul.f32 %v274_v48, %v827_v19  ;;  %v339_v2 = vmul.f32 %v275_v49, %v852_v33 }
 0x109   :  { %v431_v4 = vadd.f32 %v430_v57, %v429_v56  ;;  %v436_v5 = vadd.f32 %v336_v59, %v335_v53  ;;  %v340_v6 = vmul.f32 %v276_v54, %v859_v39  ;;  %v341_v7 = vmul.f32 %v277_v55, %v861_v40 }
 0x10a   :  { %364 = vadd.xlane.f32.xlu0 %v363_v63  ;;  %v342_v10 = vmul.f32 %v278_v60, %v866_v45  ;;  %v441_v11 = vsel %vm356_vm1, %v339_v2, 0.0  ;;  %v343_v14 = vmul.f32 %v279_v61, %v803_v8  ;;  %v344_v15 = vmul.f32 %v280_v62, %v814_v12  ;;  %v282_v8 = vld [vmem:[%s1105_s2 + $0x1d8] sm:$0xff]  ;;  %v285_v12 = vld [vmem:[%s1105_s2 + $0x1f0] sm:$0x3] }
 0x10b   :  { %v433_v18 = vadd.f32 %v432_v58, %v431_v4  ;;  %v437_v20 = vadd.f32 %v436_v5, %v337_v0  ;;  %v442_v21 = vsel %vm356_vm1, %v340_v6, 0.0  ;;  %v444_v22 = vsel %vm356_vm1, %v341_v7, 0.0 }
 0x10c   :  { %v443_v23 = vadd.f32 %v442_v21, %v441_v11  ;;  %v345_v24 = vmul.f32 %v281_v9, %v816_v13  ;;  %v450_v27 = vadd.f32 %v344_v15, %v343_v14  ;;  %v347_v28 = vmul.f32 %v283_v16, %v852_v33 }
 0x10d   :  { %434 = vadd.xlane.f32.xlu1 %v433_v18  ;;  %v438_v26 = vadd.f32 %v437_v20, %v338_v1  ;;  %v348_v29 = vmul.f32 %v284_v17, %v859_v39  ;;  %v446_v31 = vsel %vm356_vm1, %v342_v10, 0.0  ;;  %v346_v32 = vmul.f32 %v282_v8, %v827_v19 }
 0x10e   :  { %v445_v30 = vadd.f32 %v444_v22, %v443_v23  ;;  %v349_v34 = vmul.f32 %v285_v12, %v861_v40  ;;  %v451_v13 = vadd.f32 %v450_v27, %v345_v24  ;;  %v350_v35 = vmul.f32 %v286_v25, %v866_v45 }
 0x10f   :  { %439 = vadd.xlane.f32.xlu0 %v438_v26  ;;  %v455_v36 = vsel %vm356_vm1, %v347_v28, 0.0  ;;  %v456_v37 = vsel %vm356_vm1, %v348_v29, 0.0  ;;  %v481_v46 = vlaneseq }
 0x110   :  { %v447_v38 = vadd.f32 %v446_v31, %v445_v30  ;;  %v457_v41 = vadd.f32 %v456_v37, %v455_v36  ;;  %v458_v33 = vsel %vm356_vm1, %v349_v34, 0.0  ;;  %v452_v39 = vadd.f32 %v451_v13, %v346_v32 }
 0x111   :  { %v460_v19 = vsel %vm356_vm1, %v350_v35, 0.0  ;;  %v482_v49 = vand.u32 127, %v481_v46  ;;  %v484_v53 = vshrl.u32 %v481_v46, 7  ;;  %v464_v35 = vld [vmem:[%s1106_s3] sm:$0xff] }
 0x112   :  { %448 = vadd.xlane.f32.xlu1 %v447_v38  ;;  %v459_v42 = vadd.f32 %v458_v33, %v457_v41 }
 0x113   :  { %453 = vadd.xlane.f32.xlu0 %v452_v39  ;;  %v487_v51 = vadd.s32 4294967288, %v482_v49  ;;  %v485_v57 = vsub.s32 %v482_v49, %v484_v53 }
 0x114   :  { %v461_v43 = vadd.f32 %v460_v19, %v459_v42 }
 0x115   :  { %v490_v55 = vsub.s32 %v487_v51, %v484_v53 }
 0x116   :  { %462 = vadd.xlane.f32.xlu1 %v461_v43 }
 0x183   :  { %v370_v40 = vpop.xlane.xlu1 %369  ;;  %v355_v45 = vpop.xlane.xlu0 %354 }
 0x184   :  { %v497_v61 = vrot.slane %v370_v40, %v485_v57  ;;  %v486_v62 = vrot.slane %v355_v45, %v485_v57 }
 0x187   :  { %v384_v44 = vpop.xlane.xlu0 %383 }
 0x188   :  { %v379_v47 = vpop.xlane.xlu1 %378  ;;  %v506_v1 = vrot.slane %v384_v44, %v485_v57 }
 0x189   :  { %v501_v59 = vrot.slane %v379_v47, %v490_v55 }
 0x18b   :  { %v398_v48 = vpop.xlane.xlu0 %397  ;;  %v502_v2 = vsel %vm492_vm3, %v501_v59, %v497_v61 }
 0x18c   :  { %v393_v50 = vpop.xlane.xlu1 %392  ;;  %v515_v4 = vrot.slane %v398_v48, %v485_v57 }
 0x18d   :  { %v510_v60 = vrot.slane %v393_v50, %v490_v55 }
 0x18f   :  { %v412_v52 = vpop.xlane.xlu0 %411  ;;  %v511_v7 = vsel %vm492_vm3, %v510_v60, %v506_v1 }
 0x190   :  { %v407_v54 = vpop.xlane.xlu1 %406  ;;  %v524_v16 = vrot.slane %v412_v52, %v485_v57 }
 0x191   :  { %v519_v63 = vrot.slane %v407_v54, %v490_v55 }
 0x193   :  { %v426_v56 = vpop.xlane.xlu0 %425  ;;  %v520_v11 = vsel %vm492_vm3, %v519_v63, %v515_v4 }
 0x194   :  { %v533_v8 = vrot.slane %v426_v56, %v485_v57 }
 0x195   :  { %v421_v58 = vpop.xlane.xlu1 %420 }
 0x196   :  { %v528_v9 = vrot.slane %v421_v58, %v490_v55 }
 0x197   :  { %v365_v3 = vpop.xlane.xlu0 %364 }
 0x198   :  { %v491_v0 = vrot.slane %v365_v3, %v490_v55  ;;  %v529_v20 = vsel %vm492_vm3, %v528_v9, %v524_v16 }
 0x19a   :  { %v493_v5 = vsel %vm492_vm3, %v491_v0, %v486_v62  ;;  %v435_v6 = vpop.xlane.xlu1 %434 }
 0x19b   :  { %v558_v10 = vsel %vm557_vm4, %v502_v2, %v493_v5  ;;  %v537_v18 = vrot.slane %v435_v6, %v490_v55 }
 0x19c   :  { %v560_v14 = vsel %vm559_vm5, %v511_v7, %v558_v10  ;;  %v440_v15 = vpop.xlane.xlu0 %439 }
 0x19d   :  { %v562_v17 = vsel %vm561_vm6, %v520_v11, %v560_v14  ;;  %v542_v21 = vrot.slane %v440_v15, %v485_v57  ;;  %v538_v25 = vsel %vm492_vm3, %v537_v18, %v533_v8 }
 0x19e   :  { %v564_v24 = vsel %vm563_vm7, %v529_v20, %v562_v17 }
 0x19f   :  { %v449_v22 = vpop.xlane.xlu1 %448  ;;  %v566_v29 = vsel %vm565_vm8, %v538_v25, %v564_v24 }
 0x1a0   :  { %v546_v12 = vrot.slane %v449_v22, %v490_v55  ;;  %v454_v23 = vpop.xlane.xlu0 %453 }
 0x1a1   :  { %v551_v26 = vrot.slane %v454_v23, %v485_v57 }
 0x1a2   :  { %v547_v27 = vsel %vm492_vm3, %v546_v12, %v542_v21 }
 0x1a3   :  { %v463_v28 = vpop.xlane.xlu1 %462  ;;  %v568_v32 = vsel %vm567_vm9, %v547_v27, %v566_v29 }
 0x1a4   :  { %v555_v30 = vrot.slane %v463_v28, %v490_v55 }
 0x1a6   :  { %v556_v31 = vsel %vm492_vm3, %v555_v30, %v551_v26 }
 0x1a7   :  { %v570_v34 = vsel %vm569_vm10, %v556_v31, %v568_v32 }
 0x1a8   :  { %v573_v13 = vsel %vm572_vm11, %v570_v34, 0.0 }
 0x1a9   :  { %574 = vadd.xlane.f32.xlu0 %v573_v13 }
 0x236   :  { %v575_v36 = vpop.xlane.xlu0 %574 }
 0x237   :  { %v576_v37 = vadd.f32 %v575_v36, %v464_v35 }
 0x239   :  { %578 = vst.msk [vmem:[%s1106_s3] sm:$0xff] %vm18_vm2, %v576_v37 }

</bundles_post_ra>
